<compile_context>
chip_gen: v5e
topology: v5e:2x2
jax: 0.10.0
libtpu: 0.0.40
codegen_flags: <defaults>
</compile_context>

<pallas_src>
import functools

import jax
import jax.numpy as jnp
from jax import lax
from jax.experimental import pallas as pl
from jax.experimental.pallas import tpu as pltpu

ALPHA = 0.0  # unused by the reference forward pass (kept for parity)
BETA = 5.0   # unused by the reference forward pass (kept for parity)


def _round_up(x, m):
    return ((x + m - 1) // m) * m


def _custom_loss_tile_kernel(logits_ref, tgt_ref, part_ref, *, b_total, one_hot_targets):
    """Per-tile partials: part[lane 0] = sum of CE rows, part[lane 1] = #correct."""
    i = pl.program_id(0)
    logits = logits_ref[...]          # native dtype: compare/argmax path stays packed
    tgt = tgt_ref[...]                # native dtype
    TB, C = logits.shape

    # validity mask for the (possibly padded) last tile
    row = lax.broadcasted_iota(jnp.int32, (TB, 1), 0)
    valid = (i * TB + row) < b_total                               # (TB, 1) bool

    # row max in the NATIVE dtype — reused for both the CE shift and the argmax compare
    m = jnp.max(logits, axis=-1, keepdims=True)                    # (TB, 1)

    # ---- soft-target cross entropy, f32 accumulation -------------------------
    # -sum(t * log_softmax) == sum(t * (lse - z)), z = logits - m  (single reduce)
    z = logits.astype(jnp.float32) - m.astype(jnp.float32)         # (TB, C) f32
    lse = jnp.log(jnp.sum(jnp.exp(z), axis=-1, keepdims=True))     # (TB, 1) f32
    ce_row = jnp.sum(tgt.astype(jnp.float32) * (lse - z),
                     axis=-1, keepdims=True)                       # (TB, 1)
    ce_sum = jnp.sum(jnp.where(valid, ce_row, 0.0))                # scalar

    # ---- accuracy: argmax(logits) == argmax(target), first-max tie-break -----
    iota = lax.broadcasted_iota(jnp.int32, (TB, C), 1)
    pred = jnp.min(jnp.where(logits == m, iota, C), axis=-1, keepdims=True)
    if one_hot_targets:
        # one-hot targets (as in the reference spec): single reduction, exact.
        tidx = jnp.min(jnp.where(tgt >= 0.5, iota, C), axis=-1, keepdims=True)
    else:
        # general soft targets: first index of the row max (2 reductions)
        tmax = jnp.max(tgt, axis=-1, keepdims=True)
        tidx = jnp.min(jnp.where(tgt == tmax, iota, C), axis=-1, keepdims=True)
    correct = jnp.sum(jnp.where(valid & (pred == tidx), 1.0, 0.0))  # scalar

    # lane-dense (1, 1, 128) partial-sum block: lane 0 = ce_sum, lane 1 = correct
    lane = lax.broadcasted_iota(jnp.int32, (1, 1, 128), 2)
    part_ref[...] = jnp.where(lane == 0, ce_sum,
                              jnp.where(lane == 1, correct, 0.0))


def _choose_tile_rows(B, C, itemsize):
    """Batch-tile rows: budget DMA buffers AND compute temps; keep >= ~8 grid steps."""
    b_pad = _round_up(B, 8)
    # 2 inputs x 2 pipeline buffers of (TB, C) in native dtype  <= ~8 MiB
    rows_dma = (8 * 1024 * 1024) // max(1, 4 * C * itemsize)
    # ~8 live (TB, C) f32/i32 compute temporaries (z, exp, iota, selects, ...) <= ~24 MiB
    rows_tmp = (24 * 1024 * 1024) // max(1, 8 * C * 4)
    rows = min(rows_dma, rows_tmp, 2048)
    # keep the grid from collapsing: aim for >= ~8 steps when the batch allows it
    rows = min(rows, max(8, _round_up(pl.cdiv(b_pad, 8), 8)))
    rows = max(8, (rows // 8) * 8)
    if itemsize <= 2 and rows >= 16:
        rows = (rows // 16) * 16      # keep bf16 tiles sublane-pack aligned
    return min(rows, b_pad)


def _vmem_limit_bytes():
    """Generation-aware scoped-VMEM limit: ~3/4 of physical VMEM, clamped to [32, 96] MiB.

    v5e/v6e have 128 MiB physical VMEM (scoped defaults 16/32 MiB), v7x only 64 MiB,
    so this yields ~96 MiB on v5e/v6e and ~48 MiB on v7x. Always explicit — never
    fall back to v5e's 16 MiB scoped default.
    """
    cap = 64 * 1024 * 1024
    try:
        info = pltpu.get_tpu_info()
        cap = int(getattr(info, "vmem_capacity_bytes", cap) or cap)
    except Exception:
        pass
    return int(min(96 * 1024 * 1024, max(32 * 1024 * 1024, (cap * 3) // 4)))


def custom_loss(output, target, *, one_hot_targets=True):
    """output, target: (batch, num_classes) float arrays. Returns scalar loss.

    Set one_hot_targets=False if targets are general (soft / unnormalized)
    probability rows; the default matches the reference module's one-hot spec.
    """
    assert output.shape == target.shape and output.ndim == 2
    B, C = output.shape
    itemsize = max(jnp.dtype(output.dtype).itemsize, jnp.dtype(target.dtype).itemsize)
    TB = _choose_tile_rows(B, C, itemsize)
    G = pl.cdiv(B, TB)

    # deeper input buffering only helps in the truly HBM-bound (large-C) regime
    use_deep_buffering = (C * itemsize) >= 8192

    def _in_spec():
        if use_deep_buffering:
            return pl.BlockSpec((TB, C), lambda i: (i, 0), pipeline_mode=pl.Buffered(3))
        return pl.BlockSpec((TB, C), lambda i: (i, 0))

    kernel = functools.partial(
        _custom_loss_tile_kernel, b_total=B, one_hot_targets=one_hot_targets)
    parts = pl.pallas_call(
        kernel,
        out_shape=jax.ShapeDtypeStruct((G, 1, 128), jnp.float32),
        grid_spec=pltpu.PrefetchScalarGridSpec(
            num_scalar_prefetch=0,
            grid=(G,),
            in_specs=[_in_spec(), _in_spec()],
            out_specs=pl.BlockSpec((1, 1, 128), lambda i: (i, 0, 0)),
        ),
        compiler_params=pltpu.CompilerParams(
            dimension_semantics=("parallel",),
            vmem_limit_bytes=_vmem_limit_bytes(),
        ),
    )(output, target)  # native dtype in; f32 promotion happens inside the kernel

    ce_sum = jnp.sum(parts[:, 0, 0])
    correct = jnp.sum(parts[:, 0, 1])
    cross_entropy = ce_sum / B        # mean over the *global* batch
    accuracy = correct / B
    penalty = 2.0 - accuracy
    return cross_entropy * penalty
    # TODO(synk): alpha/beta of CustomLoss are unused in the reference forward; kept as constants for parity.


if __name__ == "__main__":
    key = jax.random.PRNGKey(0)
    k1, k2 = jax.random.split(key)
    batch, num_classes = 8, 128

    # model "predictions" (raw logits) and one-hot targets
    output = jax.random.normal(k1, (batch, num_classes), dtype=jnp.float32)
    labels = jax.random.randint(k2, (batch,), 0, num_classes)
    target = jax.nn.one_hot(labels, num_classes, dtype=jnp.float32)

    loss = custom_loss(output, target)                               # one-hot fast path
    loss_general = custom_loss(output, target, one_hot_targets=False)  # general path
    jax.block_until_ready(loss)
    jax.block_until_ready(loss_general)

    # sanity check against a pure-JAX reference (same math as the torch module)
    logp = jax.nn.log_softmax(output, axis=-1)
    ce_ref = jnp.mean(-jnp.sum(target * logp, axis=-1))
    acc_ref = jnp.mean(
        (jnp.argmax(output, axis=-1) == jnp.argmax(target, axis=-1)).astype(jnp.float32))
    ref = ce_ref * (2.0 - acc_ref)
    assert jnp.allclose(loss, ref, rtol=1e-5, atol=1e-5), (loss, ref)
    assert jnp.allclose(loss_general, ref, rtol=1e-5, atol=1e-5), (loss_general, ref)

    print("KERNEL_OK")
</pallas_src>

<mosaic_0001>
module attributes {stable_mosaic.version = 11 : i64} {
  func.func @_custom_loss_tile_kernel(%arg0: i32, %arg1: memref<8x128xf32, #tpu.memory_space<vmem>>, %arg2: memref<8x128xf32, #tpu.memory_space<vmem>>, %arg3: memref<1x1x128xf32, #tpu.memory_space<vmem>>) attributes {dimension_semantics = [#tpu.dimension_semantics<parallel>], iteration_bounds = array<i64: 1>, scalar_prefetch = 0 : i64, scratch_operands = 0 : i64, tpu.core_type = #tpu.core_type<tc>, window_params = [{transform_indices = @transform_0, window_bounds = array<i64: 8, 128>}, {transform_indices = @transform_1, window_bounds = array<i64: 8, 128>}, {transform_indices = @transform_2, window_bounds = array<i64: 1, 1, 128>}]} {
    %c0 = arith.constant 0 : index
    %c0_0 = arith.constant 0 : index
    %0 = vector.load %arg1[%c0, %c0_0] : memref<8x128xf32, #tpu.memory_space<vmem>>, vector<8x128xf32>
    %c0_1 = arith.constant 0 : index
    %c0_2 = arith.constant 0 : index
    %1 = vector.load %arg2[%c0_1, %c0_2] : memref<8x128xf32, #tpu.memory_space<vmem>>, vector<8x128xf32>
    %2 = tpu.iota {dimensions = array<i32: 0>} : vector<8x1xi32>
    %c8_i32 = arith.constant 8 : i32
    %3 = arith.muli %arg0, %c8_i32 : i32
    %4 = vector.broadcast %3 : i32 to vector<8x1xi32>
    %5 = arith.addi %4, %2 : vector<8x1xi32>
    %c8_i32_3 = arith.constant 8 : i32
    %6 = vector.broadcast %c8_i32_3 : i32 to vector<8x1xi32>
    %7 = arith.cmpi slt, %5, %6 : vector<8x1xi32>
    %cst = arith.constant dense<0xFF800000> : vector<8xf32>
    %8 = vector.multi_reduction <maximumf>, %0, %cst [1] : vector<8x128xf32> to vector<8xf32>
    %9 = vector.shape_cast %8 : vector<8xf32> to vector<8x1xf32>
    %10 = vector.broadcast %9 : vector<8x1xf32> to vector<8x128xf32>
    %11 = arith.subf %0, %10 : vector<8x128xf32>
    %12 = math.exp %11 : vector<8x128xf32>
    %cst_4 = arith.constant dense<0.000000e+00> : vector<8xf32>
    %13 = vector.multi_reduction <add>, %12, %cst_4 [1] : vector<8x128xf32> to vector<8xf32>
    %14 = vector.shape_cast %13 : vector<8xf32> to vector<8x1xf32>
    %15 = math.log %14 : vector<8x1xf32>
    %16 = vector.broadcast %15 : vector<8x1xf32> to vector<8x128xf32>
    %17 = arith.subf %16, %11 : vector<8x128xf32>
    %18 = arith.mulf %1, %17 : vector<8x128xf32>
    %cst_5 = arith.constant dense<0.000000e+00> : vector<8xf32>
    %19 = vector.multi_reduction <add>, %18, %cst_5 [1] : vector<8x128xf32> to vector<8xf32>
    %20 = vector.shape_cast %19 : vector<8xf32> to vector<8x1xf32>
    %cst_6 = arith.constant 0.000000e+00 : f32
    %21 = vector.broadcast %cst_6 : f32 to vector<8x1xf32>
    %22 = arith.select %7, %20, %21 : vector<8x1xi1>, vector<8x1xf32>
    %23 = vector.shape_cast %22 : vector<8x1xf32> to vector<1x8x1xf32>
    %cst_7 = arith.constant dense<0.000000e+00> : vector<1xf32>
    %24 = vector.multi_reduction <add>, %23, %cst_7 [1, 2] : vector<1x8x1xf32> to vector<1xf32>
    %25 = vector.shape_cast %24 : vector<1xf32> to vector<1x1x1xf32>
    %26 = vector.extract %25[0, 0, 0] : f32 from vector<1x1x1xf32>
    %27 = tpu.iota {dimensions = array<i32: 1>} : vector<8x128xi32>
    %28 = vector.broadcast %9 : vector<8x1xf32> to vector<8x128xf32>
    %29 = arith.cmpf oeq, %0, %28 : vector<8x128xf32>
    %c128_i32 = arith.constant 128 : i32
    %30 = vector.broadcast %c128_i32 : i32 to vector<8x128xi32>
    %31 = arith.select %29, %27, %30 : vector<8x128xi1>, vector<8x128xi32>
    %cst_8 = arith.constant dense<2147483647> : vector<8xi32>
    %32 = vector.multi_reduction <minsi>, %31, %cst_8 [1] : vector<8x128xi32> to vector<8xi32>
    %33 = vector.shape_cast %32 : vector<8xi32> to vector<8x1xi32>
    %cst_9 = arith.constant 5.000000e-01 : f32
    %34 = vector.broadcast %cst_9 : f32 to vector<8x128xf32>
    %35 = arith.cmpf oge, %1, %34 : vector<8x128xf32>
    %c128_i32_10 = arith.constant 128 : i32
    %36 = vector.broadcast %c128_i32_10 : i32 to vector<8x128xi32>
    %37 = arith.select %35, %27, %36 : vector<8x128xi1>, vector<8x128xi32>
    %cst_11 = arith.constant dense<2147483647> : vector<8xi32>
    %38 = vector.multi_reduction <minsi>, %37, %cst_11 [1] : vector<8x128xi32> to vector<8xi32>
    %39 = vector.shape_cast %38 : vector<8xi32> to vector<8x1xi32>
    %40 = arith.cmpi eq, %33, %39 : vector<8x1xi32>
    %41 = arith.andi %7, %40 : vector<8x1xi1>
    %cst_12 = arith.constant 1.000000e+00 : f32
    %cst_13 = arith.constant 0.000000e+00 : f32
    %42 = vector.broadcast %cst_12 : f32 to vector<8x1xf32>
    %43 = vector.broadcast %cst_13 : f32 to vector<8x1xf32>
    %44 = arith.select %41, %42, %43 : vector<8x1xi1>, vector<8x1xf32>
    %45 = vector.shape_cast %44 : vector<8x1xf32> to vector<1x8x1xf32>
    %cst_14 = arith.constant dense<0.000000e+00> : vector<1xf32>
    %46 = vector.multi_reduction <add>, %45, %cst_14 [1, 2] : vector<1x8x1xf32> to vector<1xf32>
    %47 = vector.shape_cast %46 : vector<1xf32> to vector<1x1x1xf32>
    %48 = vector.extract %47[0, 0, 0] : f32 from vector<1x1x1xf32>
    %49 = tpu.iota {dimensions = array<i32: 2>} : vector<1x1x128xi32>
    %c0_i32 = arith.constant 0 : i32
    %50 = vector.broadcast %c0_i32 : i32 to vector<1x1x128xi32>
    %51 = arith.cmpi eq, %49, %50 : vector<1x1x128xi32>
    %c1_i32 = arith.constant 1 : i32
    %52 = vector.broadcast %c1_i32 : i32 to vector<1x1x128xi32>
    %53 = arith.cmpi eq, %49, %52 : vector<1x1x128xi32>
    %cst_15 = arith.constant 0.000000e+00 : f32
    %54 = vector.broadcast %48 : f32 to vector<1x1x128xf32>
    %55 = vector.broadcast %cst_15 : f32 to vector<1x1x128xf32>
    %56 = arith.select %53, %54, %55 : vector<1x1x128xi1>, vector<1x1x128xf32>
    %57 = vector.broadcast %26 : f32 to vector<1x1x128xf32>
    %58 = arith.select %51, %57, %56 : vector<1x1x128xi1>, vector<1x1x128xf32>
    %c0_16 = arith.constant 0 : index
    %c0_17 = arith.constant 0 : index
    %c0_18 = arith.constant 0 : index
    %59 = vector.load %arg3[%c0_16, %c0_17, %c0_18] : memref<1x1x128xf32, #tpu.memory_space<vmem>>, vector<1x1x128xf32>
    tpu.vector_store %arg3[%c0_16, %c0_17, %c0_18], %58 {strides = array<i32>} : memref<1x1x128xf32, #tpu.memory_space<vmem>>, vector<1x1x128xf32>,
    return
  }
  func.func @transform_0(%arg0: i32) -> (i32, i32) {
    %c0_i32 = arith.constant 0 : i32
    %c0_i32_0 = arith.constant 0 : i32
    return %arg0, %c0_i32 : i32, i32
  }
  func.func @transform_1(%arg0: i32) -> (i32, i32) {
    %c0_i32 = arith.constant 0 : i32
    %c0_i32_0 = arith.constant 0 : i32
    return %arg0, %c0_i32 : i32, i32
  }
  func.func @transform_2(%arg0: i32) -> (i32, i32, i32) {
    %c0_i32 = arith.constant 0 : i32
    %c0_i32_0 = arith.constant 0 : i32
    %c0_i32_1 = arith.constant 0 : i32
    return %arg0, %c0_i32, %c0_i32_0 : i32, i32, i32
  }
}

</mosaic_0001>

<bundles_post_ra>
// kernel: tpu_custom_call.1
= control target key start
LH: loop header
LB: loop body
LE: loop exit
PB: predicated region body
PF: predicated region fallthrough
CT: control target
= control target key end

     0   :  { %7 = vsyncpa [#allocation3], 0  ;;  %s269_s0 = inlined_call_operand.hbm [shape: f32[8,128], index: 0, kind: input, shape index: {}]   ;;  %s270_s1 = inlined_call_operand.hbm [shape: f32[8,128], index: 1, kind: input, shape index: {}]   ;;  %s271_s2 = inlined_call_operand.hbm [shape: f32[1,1,128], index: 2, kind: output, shape index: {}]  }
   0x1   :  { %8 = vsyncpa [#allocation6], 0 }
   0x2   :  { %9 = vsyncpa [#allocation4], 0  ;;  %s15_s11 = sshll.u32 %s269_s0, 4  ;;  %s235_s12 = smov [#allocation2]   ;;  %s16_s11 = int_to_ptr.hbm [resolvable:$true] %s15_s11 }
   0x3   :  { %s17_s13 = sshll.u32 %s235_s12, 4  ;;  %s26_s16 = sshll.u32 %s270_s1, 4  ;;  %s18_s13 = int_to_ptr.vmem [resolvable:$true] %s17_s13  ;;  %s27_s16 = int_to_ptr.hbm [resolvable:$true] %s26_s16 }
   0x4   :  { %20 = dma.hbm_to_vmem [thread:$0]  %s16_s11, 128, %s18_s13, [#allocation3]  }
   0x5   :  { %s236_s17 = smov [#allocation5]  }
   0x6   :  { %s28_s18 = sshll.u32 %s236_s17, 4  ;;  %s29_s18 = int_to_ptr.vmem [resolvable:$true] %s28_s18 }
   0x7   :  { %31 = dma.hbm_to_vmem [thread:$0]  %s27_s16, 128, %s29_s18, [#allocation6]  }
   0x8   :  { %229 = dma.done.wait [#allocation3], 128  }
   0x9   :  { %230 = vsyncadd [#allocation3], 4294967168 }
   0xa   :  { %231 = dma.done.wait [#allocation6], 128  }
   0xb   :  { %232 = vsyncadd [#allocation6], 4294967168  ;;  %v40_v0 = vld [vmem:[#allocation2] sm:$0xff]  ;;  %v73_v1 = vlaneseq  ;;  %v41_v3 = vld [vmem:[#allocation5] sm:$0xff]  ;;  %vm62_vm4 = vcmask 7168   ;;  %v237_v37 = vmov 0.0  }
   0xc   :  { %48 = vmax.xlane.f32.xlu0 %v40_v0  ;;  %vm91_vm1 = vcmp.ge.f32.partialorder %v41_v3, 0.5  ;;  %s238_s0 = smov [#allocation7]   ;;  %s134_s22 = sshll.u32 %s271_s2, 4  ;;  %s135_s22 = int_to_ptr.hbm [resolvable:$true] %s134_s22 }
   0xd   :  { %v260_v2 = vand.u32 127, %v73_v1  ;;  %s132_s1 = sshll.u32 %s238_s0, 4  ;;  %s133_s1 = int_to_ptr.vmem [resolvable:$true] %s132_s1 }
   0xf   :  { %v92_v9 = vsel %vm91_vm1, %v260_v2, 128  ;;  %vm121_vm6 = vcmp.eq.s32.totalorder %v260_v2, 1  ;;  %vm120_vm7 = vcmp.eq.s32.totalorder %v260_v2, 0 }
  0x10   :  { %v94_v11 = vshra.s32 %v92_v9, 16  ;;  %v93_v18 = vand.u32 65535, %v92_v9 }
  0x12   :  { %v96_v13 = vcvt.s32.f32 %v94_v11  ;;  %v95_v20 = vcvt.s32.f32 %v93_v18 }
  0x7f   :  { %v49_v4 = vpop.xlane.xlu0 %48 }
  0x80   :  { %v50_v5 = vsub.f32 %v40_v0, %v49_v4  ;;  %vm75_vm0 = vcmp.eq.f32.partialorder %v40_v0, %v49_v4 }
  0x81   :  { %v76_v6 = vsel %vm75_vm0, %v260_v2, 128 }
  0x82   :  { %v51_v7 = vmul.f32 1.442695, %v50_v5  ;;  %v78_v8 = vshra.s32 %v76_v6, 16  ;;  %v77_v14 = vand.u32 65535, %v76_v6 }
  0x84   :  { %153 = vpow2.f32 %v51_v7  ;;  %v80_v10 = vcvt.s32.f32 %v78_v8  ;;  %v79_v16 = vcvt.s32.f32 %v77_v14 }
  0x86   :  { %81 = vmin.xlane.f32.xlu1 %v80_v10 }
  0x8a   :  { %v154_v12 = vpop.eup %153 }
  0x8b   :  { %53 = vadd.xlane.f32.xlu0 %v154_v12 }
  0x8e   :  { %97 = vmin.xlane.f32.xlu1 %v96_v13 }
  0xf9   :  { %v82_v15 = vpop.xlane.xlu1 %81 }
  0xfa   :  { %vm83_vm2 = vcmp.eq.f32.partialorder %v80_v10, %v82_v15  ;;  %v88_v28 = vcvt.f32.s32 %v82_v15 }
  0xfb   :  { %v84_v17 = vsel %vm83_vm2, %v79_v16, inf }
  0xfc   :  { %85 = vmin.xlane.f32.xlu2 %v84_v17  ;;  %v89_v32 = vshll.u32 %v88_v28, 16 }
  0xfe   :  { %v54_v19 = vpop.xlane.xlu0 %53 }
  0xff   :  { %155 = vlog2.f32 %v54_v19 }
 0x101   :  { %v98_v21 = vpop.xlane.xlu1 %97 }
 0x102   :  { %vm99_vm3 = vcmp.eq.f32.partialorder %v96_v13, %v98_v21  ;;  %v104_v29 = vcvt.f32.s32 %v98_v21 }
 0x103   :  { %v100_v22 = vsel %vm99_vm3, %v95_v20, inf }
 0x104   :  { %101 = vmin.xlane.f32.xlu2 %v100_v22  ;;  %v105_v33 = vshll.u32 %v104_v29, 16 }
 0x105   :  { %v156_v23 = vpop.eup %155 }
 0x106   :  { %v56_v24 = vmul.f32 0.6931472, %v156_v23 }
 0x108   :  { %v57_v25 = vsub.f32 %v56_v24, %v50_v5 }
 0x10a   :  { %v58_v26 = vmul.f32 %v57_v25, %v41_v3 }
 0x10c   :  { %59 = vadd.xlane.f32.xlu0 %v58_v26 }
 0x16f   :  { %v86_v27 = vpop.xlane.xlu2 %85 }
 0x170   :  { %v87_v30 = vcvt.f32.s32 %v86_v27 }
 0x172   :  { %v90_v35 = vadd.s32 %v89_v32, %v87_v30 }
 0x177   :  { %v102_v31 = vpop.xlane.xlu2 %101 }
 0x178   :  { %v103_v34 = vcvt.f32.s32 %v102_v31 }
 0x17a   :  { %v106_v36 = vadd.s32 %v105_v33, %v103_v34 }
 0x17c   :  { %vm107_vm5 = vcmp.eq.s32.totalorder %v90_v35, %v106_v36 }
 0x17d   :  { %v109_v38 = vsel %vm107_vm5, 1.0, %v237_v37 }
 0x17e   :  { %v110_v39 = vsel %vm62_vm4, %v109_v38, 0.0 }
 0x17f   :  { %111 = vadd.xlane.f32.xlu2 %v110_v39  ;;  %v60_v40 = vpop.xlane.xlu0 %59 }
 0x180   :  { %v63_v41 = vsel %vm62_vm4, %v60_v40, 0.0 }
 0x181   :  { %64 = vadd.xlane.f32.xlu1 %v63_v41 }
 0x1f2   :  { %v112_v42 = vpop.xlane.xlu2 %111 }
 0x1f3   :  { %v113_v43 = vrot.slane %v112_v42, 4 }
 0x1f4   :  { %v65_v44 = vpop.xlane.xlu1 %64 }
 0x1f5   :  { %v114_v45 = vadd.f32 %v113_v43, %v112_v42  ;;  %v66_v46 = vrot.slane %v65_v44, 4 }
 0x1f7   :  { %v115_v47 = vrot.slane %v114_v45, 2  ;;  %v67_v48 = vadd.f32 %v66_v46, %v65_v44 }
 0x1f9   :  { %v116_v49 = vadd.f32 %v115_v47, %v114_v45  ;;  %v68_v50 = vrot.slane %v67_v48, 2 }
 0x1fb   :  { %v69_v51 = vadd.f32 %v68_v50, %v67_v48  ;;  %v117_v52 = vrot.slane %v116_v49, 1 }
 0x1fd   :  { %v70_v53 = vrot.slane %v69_v51, 1  ;;  %v118_v55 = vadd.f32 %v117_v52, %v116_v49 }
 0x1ff   :  { %v71_v54 = vadd.f32 %v70_v53, %v69_v51 }
 0x201   :  { %145 = vpush %v71_v54 }
 0x202   :  { %147 = vpush %v118_v55 }
 0x232   :  { %s146_s19 = spop %145 }
 0x233   :  { %v124_v56 = vstv %s146_s19  ;;  %s148_s23 = spop %147 }
 0x234   :  { %v122_v57 = vstv %s148_s23 }
 0x235   :  { %v123_v58 = vsel %vm121_vm6, %v122_v57, 0.0 }
 0x236   :  { %v125_v59 = vsel %vm120_vm7, %v124_v56, %v123_v58 }
 0x237   :  { %126 = vst [vmem:[#allocation7] sm:$0x1] %v125_v59 }
 0x238   :  { %137 = dma.vmem_to_hbm [thread:$0]  %s133_s1, 16, %s135_s22, [#allocation4]  }
 0x239   :  { %233 = dma.done.wait [#allocation4], 16  }
 0x23a   :  { %234 = vsyncadd [#allocation4], 4294967280 }
 0x23b   :  { %142 = vsyncpa [#allocation3], 1 }
 0x23c   :  { %143 = vsyncpa [#allocation6], 1 }
 0x23d   :  { %144 = vsyncpa [#allocation4], 1 }

</bundles_post_ra>
